<compile_context>
chip_gen: v6e
topology: v6e:2x2x1
jax: 0.10.0
libtpu: 0.0.40
codegen_flags: <defaults>
</compile_context>

<pallas_src>
import math

import jax
import jax.numpy as jnp
from jax import lax
from jax.experimental import pallas as pl
from jax.experimental.pallas import tpu as pltpu

EPS = 1e-6        # Consts.Eps
NEG_BIG = -1e9    # random-drop penalty


# ----------------------------------------------------------------------------
# Pallas kernels
# ----------------------------------------------------------------------------
def _mm(x, w, b):
    return jnp.dot(x, w, preferred_element_type=jnp.float32) + b


def _quantize_kernel(coeff_ref, x_ref, cb_ref, cbsq_ref, drop_ref, gumb_ref,
                     logit_ref, code_ref, deq_ref):
    """Per (batch n, group m, HW-tile) block:
         dist  = ||x - c||^2
         logit = dist * (-temperature/sqrt(K)) + drop_offset
         sample = one-hot(argmax(logit + gumbel))   (hard gumbel-softmax fwd value)
         code   = argmax(logit)
         deq    = sample @ codebook                  (fused dequantization)
    """
    m_idx = pl.program_id(1)

    x = x_ref[0, 0]            # (THW, D)
    c = cb_ref[0]              # (K, D)
    c2 = cbsq_ref[0]           # (1, K)  (precomputed ||c||^2)
    k = c.shape[0]

    # squared euclidean distance:  ||x||^2 + ||c||^2 - 2 x.c^T
    x2 = jnp.sum(x * x, axis=-1, keepdims=True)                    # (THW, 1)
    inter = lax.dot_general(x, c, (((1,), (1,)), ((), ())),
                            preferred_element_type=jnp.float32)    # (THW, K)
    dist = x2 + c2 - 2.0 * inter

    # logit = -dist/sqrt(K) * LowerBound(temperature, eps) + random-drop offset
    logit = dist * coeff_ref[m_idx] + drop_ref[0, 0]
    noisy = logit + gumb_ref[0, 0]

    # argmax via max + first-index-of-max (avoids argmax lowering, matches ties)
    iota = lax.broadcasted_iota(jnp.int32, logit.shape, 1)
    max_noisy = jnp.max(noisy, axis=-1, keepdims=True)
    samp_idx = jnp.min(jnp.where(noisy == max_noisy, iota, k),
                       axis=-1, keepdims=True)                      # (THW, 1)
    sample = (iota == samp_idx).astype(jnp.float32)                 # (THW, K)
    max_logit = jnp.max(logit, axis=-1, keepdims=True)
    code = jnp.min(jnp.where(logit == max_logit, iota, k),
                   axis=-1, keepdims=True)                          # (THW, 1)

    logit_ref[0, 0] = logit
    code_ref[0, 0] = code.astype(jnp.int32)
    deq_ref[0, 0] = jnp.dot(sample, c, preferred_element_type=jnp.float32)


def _enc2_kernel(x_ref, w1_ref, b1_ref, w2_ref, b2_ref, q_ref):
    """Last encode level: q = quantizationHead(latentStageEncoder(x))."""
    z = _mm(x_ref[...], w1_ref[...], b1_ref[...])
    q_ref[...] = _mm(z, w2_ref[...], b2_ref[...])


def _enc3_kernel(x_ref, w1_ref, b1_ref, w2_ref, b2_ref, w3_ref, b3_ref,
                 q_ref, zh_ref):
    """Encode level with latentHead: emit both q and latentHead(z) from one z tile."""
    z = _mm(x_ref[...], w1_ref[...], b1_ref[...])
    q_ref[...] = _mm(z, w2_ref[...], b2_ref[...])
    zh_ref[...] = _mm(z, w3_ref[...], b3_ref[...])


def _dec2_kernel(x_ref, wd_ref, bd_ref, wr_ref, br_ref, o_ref):
    """Deepest decode level: restoreHead(dequantizationHead(deq))."""
    xh = _mm(x_ref[...], wd_ref[...], bd_ref[...])
    o_ref[...] = _mm(xh, wr_ref[...], br_ref[...])


def _dec3_kernel(x_ref, f_ref, wd_ref, bd_ref, ws_ref, bs_ref, wr_ref, br_ref,
                 o_ref):
    """Decode level with sideHead: restoreHead(dequantHead(deq) + sideHead(former))."""
    xh = _mm(x_ref[...], wd_ref[...], bd_ref[...]) + _mm(f_ref[...], ws_ref[...], bs_ref[...])
    o_ref[...] = _mm(xh, wr_ref[...], br_ref[...])


# ----------------------------------------------------------------------------
# Wrappers
# ----------------------------------------------------------------------------
def _fused_heads_call(kernel, acts, weight_biases, num_out):
    """Row-tiled chain of pointwise (1x1 conv) matmuls on channels-last (R, C)."""
    r = acts[0].shape[0]
    cout = weight_biases[-1][0].shape[1]
    tile_r = r if r <= 512 else 512
    grid = (pl.cdiv(r, tile_r),)

    in_specs, args = [], []
    for a in acts:
        in_specs.append(pl.BlockSpec((tile_r, a.shape[1]), lambda i: (i, 0)))
        args.append(a)
    for wt, bias in weight_biases:
        in_specs.append(pl.BlockSpec(wt.shape, lambda i: (0, 0)))     # resident
        in_specs.append(pl.BlockSpec(bias.shape, lambda i: (0, 0)))   # resident
        args.append(wt)
        args.append(bias)

    out_specs = [pl.BlockSpec((tile_r, cout), lambda i: (i, 0)) for _ in range(num_out)]
    out_shape = [jax.ShapeDtypeStruct((r, cout), jnp.float32) for _ in range(num_out)]

    return pl.pallas_call(
        kernel,
        grid=grid,
        in_specs=in_specs,
        out_specs=out_specs,
        out_shape=out_shape,
        compiler_params=pltpu.CompilerParams(dimension_semantics=("parallel",)),
    )(*args)


def quantize(q_nm, lv, key):
    """q_nm: (N, M, HW, D).  Returns:
         logit (N, M, HW, K) f32, code (N, M, HW, 1) i32, deq (N, M, HW, D) f32."""
    n, m, hw, d = q_nm.shape
    k = lv["codebook"].shape[1]
    bits = math.log2(k)

    # _randomDrop:  rand**exp < freqEMA  <=>  rand < freqEMA ** (1/exp)
    freq = lv["freqEMA"]                                              # (M, K)
    code_usage = jnp.clip(jnp.mean((freq > EPS).astype(jnp.float32)), 0.0, 1.0)
    exponent = -(bits - 1.0) * code_usage ** 2 + bits
    thresh = freq ** (1.0 / exponent)                                 # (M, K)

    k_u, k_g = jax.random.split(key)
    u = jax.random.uniform(k_u, (n, m, hw, k), jnp.float32)
    drop = jnp.where(u < thresh[None, :, None, :], NEG_BIG, 0.0).astype(jnp.float32)
    gumbel = jax.random.gumbel(k_g, (n, m, hw, k), dtype=jnp.float32)

    # fold (-1/sqrt(K)) * LowerBound(temperature, eps) into a per-group scalar
    coeff = ((-1.0 / math.sqrt(k)) * jnp.maximum(lv["temperature"], EPS)
             ).astype(jnp.float32)                                    # (M,)
    cbsq = jnp.sum(lv["codebook"] ** 2, axis=-1)[:, None, :]          # (M, 1, K)

    thw = hw if hw <= 1024 else 512
    grid = (n, m, pl.cdiv(hw, thw))

    logit, code, deq = pl.pallas_call(
        _quantize_kernel,
        grid=grid,
        in_specs=[
            pl.BlockSpec(memory_space=pltpu.MemorySpace.SMEM),              # coeff (M,)
            pl.BlockSpec((1, 1, thw, d), lambda i, j, t: (i, j, t, 0)),     # x
            pl.BlockSpec((1, k, d),      lambda i, j, t: (j, 0, 0)),        # codebook
            pl.BlockSpec((1, 1, k),      lambda i, j, t: (j, 0, 0)),        # ||c||^2
            pl.BlockSpec((1, 1, thw, k), lambda i, j, t: (i, j, t, 0)),     # drop offset
            pl.BlockSpec((1, 1, thw, k), lambda i, j, t: (i, j, t, 0)),     # gumbel
        ],
        out_specs=[
            pl.BlockSpec((1, 1, thw, k), lambda i, j, t: (i, j, t, 0)),
            pl.BlockSpec((1, 1, thw, 1), lambda i, j, t: (i, j, t, 0)),
            pl.BlockSpec((1, 1, thw, d), lambda i, j, t: (i, j, t, 0)),
        ],
        out_shape=[
            jax.ShapeDtypeStruct((n, m, hw, k), jnp.float32),
            jax.ShapeDtypeStruct((n, m, hw, 1), jnp.int32),
            jax.ShapeDtypeStruct((n, m, hw, d), jnp.float32),
        ],
        compiler_params=pltpu.CompilerParams(
            dimension_semantics=("parallel", "parallel", "parallel")),
    )(coeff, q_nm, lv["codebook"], cbsq, drop, gumbel)
    return logit, code, deq


# ----------------------------------------------------------------------------
# Parameter init (deterministic, synthetic — no checkpoint loading)
# ----------------------------------------------------------------------------
def init_params(key, channel, m, ks):
    d = channel // m
    num_levels = len(ks)
    std_cb = math.sqrt(2.0 / (5.0 * channel / m))
    levels = []
    for i, ki in enumerate(ks):
        key, *subs = jax.random.split(key, 8)

        def conv(kk):
            w = jax.random.normal(kk, (channel, channel), jnp.float32) / math.sqrt(channel)
            b = jnp.zeros((1, channel), jnp.float32)
            return (w, b)

        levels.append(dict(
            codebook=jax.random.normal(subs[0], (m, ki, d), jnp.float32) * std_cb,
            temperature=jnp.ones((m,), jnp.float32),       # LowerBound(eps) -> 1.0
            freqEMA=jnp.zeros((m, ki), jnp.float32),       # entropy-coder EMA buffer
            latentStageEncoder=conv(subs[1]),
            quantizationHead=conv(subs[2]),
            latentHead=conv(subs[3]) if i < num_levels - 1 else None,
            dequantizationHead=conv(subs[4]),
            sideHead=conv(subs[5]) if i < num_levels - 1 else None,
            restoreHead=conv(subs[6]),
        ))
    return levels


# ----------------------------------------------------------------------------
# UMGMQuantizer.forward
# ----------------------------------------------------------------------------
def umgm_forward(levels, x, seed=0):
    n, c, h, w = x.shape
    hw = h * w
    r = n * hw
    # NCHW -> channels-last (N*HW, C) once at entry.
    cur = jnp.transpose(x, (0, 2, 3, 1)).reshape(r, c)

    key = jax.random.PRNGKey(seed)
    deqs, codes, logits = [], [], []
    for lv in levels:
        key, kq = jax.random.split(key)
        m, k, d = lv["codebook"].shape

        if lv["latentHead"] is not None:
            q_cl, zh_cl = _fused_heads_call(
                _enc3_kernel, [cur],
                [lv["latentStageEncoder"], lv["quantizationHead"], lv["latentHead"]], 2)
        else:
            (q_cl,) = _fused_heads_call(
                _enc2_kernel, [cur],
                [lv["latentStageEncoder"], lv["quantizationHead"]], 1)
            zh_cl = None

        # (R, C) -> (N, M, HW, D): channel splits as (m major, d minor), like torch.
        q_nm = jnp.transpose(q_cl.reshape(n, hw, m, d), (0, 2, 1, 3))
        logit, code, deq = quantize(q_nm, lv, kq)
        deq_cl = jnp.transpose(deq, (0, 2, 1, 3)).reshape(r, m * d)

        codes.append(code.reshape(n, m, h, w))
        logits.append(logit.reshape(n, m, h, w, k))
        deqs.append(deq_cl)

        if zh_cl is not None:                     # residual for next level
            cur = zh_cl - deq_cl

    former = None
    for lv, deq_cl in zip(levels[::-1], deqs[::-1]):
        if lv["sideHead"] is not None:
            (former,) = _fused_heads_call(
                _dec3_kernel, [deq_cl, former],
                [lv["dequantizationHead"], lv["sideHead"], lv["restoreHead"]], 1)
        else:
            (former,) = _fused_heads_call(
                _dec2_kernel, [deq_cl],
                [lv["dequantizationHead"], lv["restoreHead"]], 1)

    out = jnp.transpose(former.reshape(n, h, w, c), (0, 3, 1, 2))
    # TODO(synk): self._entropyCoder(oneHots) freqEMA update (side effect) omitted.
    return out, codes, logits


if __name__ == "__main__":
    channel, m, ks = 32, 4, [8, 8]
    n, h, w = 2, 8, 8

    root = jax.random.PRNGKey(0)
    k_params, k_x = jax.random.split(root)
    levels = init_params(k_params, channel, m, ks)
    x = jax.random.normal(k_x, (n, channel, h, w), jnp.float32)

    former_level, codes, logits = umgm_forward(levels, x, seed=0)

    jax.block_until_ready(former_level)
    for c_ in codes:
        jax.block_until_ready(c_)
    for l_ in logits:
        jax.block_until_ready(l_)

    assert former_level.shape == (n, channel, h, w)
    assert all(c_.shape == (n, m, h, w) and c_.dtype == jnp.int32 for c_ in codes)
    assert all(l_.shape == (n, m, h, w, ki) for l_, ki in zip(logits, ks))
    print("KERNEL_OK")
</pallas_src>

<mosaic_0001>
module attributes {stable_mosaic.version = 11 : i64} {
  func.func @_enc3_kernel(%arg0: i32, %arg1: memref<128x32xf32, #tpu.memory_space<vmem>>, %arg2: memref<32x32xf32, #tpu.memory_space<vmem>>, %arg3: memref<1x32xf32, #tpu.memory_space<vmem>>, %arg4: memref<32x32xf32, #tpu.memory_space<vmem>>, %arg5: memref<1x32xf32, #tpu.memory_space<vmem>>, %arg6: memref<32x32xf32, #tpu.memory_space<vmem>>, %arg7: memref<1x32xf32, #tpu.memory_space<vmem>>, %arg8: memref<128x32xf32, #tpu.memory_space<vmem>>, %arg9: memref<128x32xf32, #tpu.memory_space<vmem>>) attributes {dimension_semantics = [#tpu.dimension_semantics<parallel>], iteration_bounds = array<i64: 1>, scalar_prefetch = 0 : i64, scratch_operands = 0 : i64, tpu.core_type = #tpu.core_type<tc>, window_params = [{transform_indices = @transform_0, window_bounds = array<i64: 128, 32>}, {pipeline_mode = #tpu.pipeline_mode<synchronous>, transform_indices = @transform_1, window_bounds = array<i64: 32, 32>}, {pipeline_mode = #tpu.pipeline_mode<synchronous>, transform_indices = @transform_2, window_bounds = array<i64: 1, 32>}, {pipeline_mode = #tpu.pipeline_mode<synchronous>, transform_indices = @transform_3, window_bounds = array<i64: 32, 32>}, {pipeline_mode = #tpu.pipeline_mode<synchronous>, transform_indices = @transform_4, window_bounds = array<i64: 1, 32>}, {pipeline_mode = #tpu.pipeline_mode<synchronous>, transform_indices = @transform_5, window_bounds = array<i64: 32, 32>}, {pipeline_mode = #tpu.pipeline_mode<synchronous>, transform_indices = @transform_6, window_bounds = array<i64: 1, 32>}, {transform_indices = @transform_7, window_bounds = array<i64: 128, 32>}, {transform_indices = @transform_8, window_bounds = array<i64: 128, 32>}]} {
    %c0 = arith.constant 0 : index
    %c0_0 = arith.constant 0 : index
    %0 = vector.load %arg1[%c0, %c0_0] : memref<128x32xf32, #tpu.memory_space<vmem>>, vector<128x32xf32>
    %c0_1 = arith.constant 0 : index
    %c0_2 = arith.constant 0 : index
    %1 = vector.load %arg2[%c0_1, %c0_2] : memref<32x32xf32, #tpu.memory_space<vmem>>, vector<32x32xf32>
    %c0_3 = arith.constant 0 : index
    %c0_4 = arith.constant 0 : index
    %2 = vector.load %arg3[%c0_3, %c0_4] : memref<1x32xf32, #tpu.memory_space<vmem>>, vector<1x32xf32>
    %cst = arith.constant dense<0.000000e+00> : vector<128x32xf32>
    %3 = tpu.matmul %0, %1, %cst {dimension_numbers = #tpu.dot_dimension_numbers<[1], [0], [0], [1], [0, 0, 1, 1], [], []>} : vector<128x32xf32>, vector<32x32xf32>, vector<128x32xf32> -> vector<128x32xf32>
    %4 = vector.broadcast %2 : vector<1x32xf32> to vector<128x32xf32>
    %5 = arith.addf %3, %4 : vector<128x32xf32>
    %c0_5 = arith.constant 0 : index
    %c0_6 = arith.constant 0 : index
    %6 = vector.load %arg4[%c0_5, %c0_6] : memref<32x32xf32, #tpu.memory_space<vmem>>, vector<32x32xf32>
    %c0_7 = arith.constant 0 : index
    %c0_8 = arith.constant 0 : index
    %7 = vector.load %arg5[%c0_7, %c0_8] : memref<1x32xf32, #tpu.memory_space<vmem>>, vector<1x32xf32>
    %cst_9 = arith.constant dense<0.000000e+00> : vector<128x32xf32>
    %8 = tpu.matmul %5, %6, %cst_9 {dimension_numbers = #tpu.dot_dimension_numbers<[1], [0], [0], [1], [0, 0, 1, 1], [], []>} : vector<128x32xf32>, vector<32x32xf32>, vector<128x32xf32> -> vector<128x32xf32>
    %9 = vector.broadcast %7 : vector<1x32xf32> to vector<128x32xf32>
    %10 = arith.addf %8, %9 : vector<128x32xf32>
    %c0_10 = arith.constant 0 : index
    %c0_11 = arith.constant 0 : index
    %11 = vector.load %arg8[%c0_10, %c0_11] : memref<128x32xf32, #tpu.memory_space<vmem>>, vector<128x32xf32>
    tpu.vector_store %arg8[%c0_10, %c0_11], %10 {strides = array<i32>} : memref<128x32xf32, #tpu.memory_space<vmem>>, vector<128x32xf32>,
    %c0_12 = arith.constant 0 : index
    %c0_13 = arith.constant 0 : index
    %12 = vector.load %arg6[%c0_12, %c0_13] : memref<32x32xf32, #tpu.memory_space<vmem>>, vector<32x32xf32>
    %c0_14 = arith.constant 0 : index
    %c0_15 = arith.constant 0 : index
    %13 = vector.load %arg7[%c0_14, %c0_15] : memref<1x32xf32, #tpu.memory_space<vmem>>, vector<1x32xf32>
    %cst_16 = arith.constant dense<0.000000e+00> : vector<128x32xf32>
    %14 = tpu.matmul %5, %12, %cst_16 {dimension_numbers = #tpu.dot_dimension_numbers<[1], [0], [0], [1], [0, 0, 1, 1], [], []>} : vector<128x32xf32>, vector<32x32xf32>, vector<128x32xf32> -> vector<128x32xf32>
    %15 = vector.broadcast %13 : vector<1x32xf32> to vector<128x32xf32>
    %16 = arith.addf %14, %15 : vector<128x32xf32>
    %c0_17 = arith.constant 0 : index
    %c0_18 = arith.constant 0 : index
    %17 = vector.load %arg9[%c0_17, %c0_18] : memref<128x32xf32, #tpu.memory_space<vmem>>, vector<128x32xf32>
    tpu.vector_store %arg9[%c0_17, %c0_18], %16 {strides = array<i32>} : memref<128x32xf32, #tpu.memory_space<vmem>>, vector<128x32xf32>,
    return
  }
  func.func @transform_0(%arg0: i32) -> (i32, i32) {
    %c0_i32 = arith.constant 0 : i32
    %c0_i32_0 = arith.constant 0 : i32
    return %arg0, %c0_i32 : i32, i32
  }
  func.func @transform_1(%arg0: i32) -> (i32, i32) {
    %c0_i32 = arith.constant 0 : i32
    %c0_i32_0 = arith.constant 0 : i32
    %c0_i32_1 = arith.constant 0 : i32
    return %c0_i32, %c0_i32_0 : i32, i32
  }
  func.func @transform_2(%arg0: i32) -> (i32, i32) {
    %c0_i32 = arith.constant 0 : i32
    %c0_i32_0 = arith.constant 0 : i32
    %c0_i32_1 = arith.constant 0 : i32
    return %c0_i32, %c0_i32_0 : i32, i32
  }
  func.func @transform_3(%arg0: i32) -> (i32, i32) {
    %c0_i32 = arith.constant 0 : i32
    %c0_i32_0 = arith.constant 0 : i32
    %c0_i32_1 = arith.constant 0 : i32
    return %c0_i32, %c0_i32_0 : i32, i32
  }
  func.func @transform_4(%arg0: i32) -> (i32, i32) {
    %c0_i32 = arith.constant 0 : i32
    %c0_i32_0 = arith.constant 0 : i32
    %c0_i32_1 = arith.constant 0 : i32
    return %c0_i32, %c0_i32_0 : i32, i32
  }
  func.func @transform_5(%arg0: i32) -> (i32, i32) {
    %c0_i32 = arith.constant 0 : i32
    %c0_i32_0 = arith.constant 0 : i32
    %c0_i32_1 = arith.constant 0 : i32
    return %c0_i32, %c0_i32_0 : i32, i32
  }
  func.func @transform_6(%arg0: i32) -> (i32, i32) {
    %c0_i32 = arith.constant 0 : i32
    %c0_i32_0 = arith.constant 0 : i32
    %c0_i32_1 = arith.constant 0 : i32
    return %c0_i32, %c0_i32_0 : i32, i32
  }
  func.func @transform_7(%arg0: i32) -> (i32, i32) {
    %c0_i32 = arith.constant 0 : i32
    %c0_i32_0 = arith.constant 0 : i32
    return %arg0, %c0_i32 : i32, i32
  }
  func.func @transform_8(%arg0: i32) -> (i32, i32) {
    %c0_i32 = arith.constant 0 : i32
    %c0_i32_0 = arith.constant 0 : i32
    return %arg0, %c0_i32 : i32, i32
  }
}

</mosaic_0001>

<bundles_post_ra>
// kernel: tpu_custom_call.1
= control target key start
LH: loop header
LB: loop body
LE: loop exit
PB: predicated region body
PF: predicated region fallthrough
CT: control target
= control target key end

     0   :  { %vm55_vm0 = vcmask 261120   ;;  %s1214_s1 = inlined_call_operand.vmem [shape: f32[32,32], index: 1, kind: input, shape index: {}]   ;;  %s1215_s0 = inlined_call_operand.vmem [shape: f32[128,32], index: 0, kind: input, shape index: {}]   ;;  %s1216_s3 = inlined_call_operand.vmem [shape: f32[32,32], index: 3, kind: input, shape index: {}]   ;;  %s1217_s5 = inlined_call_operand.vmem [shape: f32[32,32], index: 5, kind: input, shape index: {}]   ;;  %s1218_s2 = inlined_call_operand.vmem [shape: f32[1,32], index: 2, kind: input, shape index: {}]   ;;  %s1219_s4 = inlined_call_operand.vmem [shape: f32[1,32], index: 4, kind: input, shape index: {}]   ;;  %s1220_s6 = inlined_call_operand.vmem [shape: f32[1,32], index: 6, kind: input, shape index: {}]   ;;  %s1221_s7 = inlined_call_operand.vmem [shape: f32[128,32], index: 7, kind: output, shape index: {0}]   ;;  %s1222_s8 = inlined_call_operand.vmem [shape: f32[128,32], index: 8, kind: output, shape index: {1}]  }
   0x1   :  { %v47_v0 = vld [vmem:[%s1214_s1 + $0x18] sm:$0xff]  ;;  %v46_v1 = vld [vmem:[%s1214_s1 + $0x10] sm:$0xff]  ;;  %v28_v2 = vld [vmem:[%s1215_s0] sm:$0xff] }
   0x2   :  { %760 = vmatprep.subr.mxu0 %v47_v0  ;;  %856 = vmatprep.subr.mxu1 %v47_v0  ;;  %v45_v3 = vld [vmem:[%s1214_s1 + $0x8] sm:$0xff]  ;;  %v44_v4 = vld [vmem:[%s1214_s1] sm:$0xff]  ;;  %v30_v6 = vld [vmem:[%s1215_s0 + $0x10] sm:$0xff] }
   0x3   :  { %761 = vmatpush3.msra.mxu0 %v47_v0  ;;  %768 = vmatprep.mubr.msk.f32.mxu0 %vm55_vm0, %v28_v2  ;;  %v29_v5 = vld [vmem:[%s1215_s0 + $0x8] sm:$0xff]  ;;  %v36_v7 = vld [vmem:[%s1215_s0 + $0x40] sm:$0xff]  ;;  %v252_v9 = vld [vmem:[%s1216_s3 + $0x18] sm:$0xff] }
   0x4   :  { %762 = vmatprep.subr.mxu0 %v46_v1  ;;  %860 = vmatpush3.msra.mxu1 %v47_v0  ;;  %v37_v8 = vld [vmem:[%s1215_s0 + $0x48] sm:$0xff]  ;;  %v38_v10 = vld [vmem:[%s1215_s0 + $0x50] sm:$0xff]  ;;  %v472_v11 = vld [vmem:[%s1217_s5 + $0x18] sm:$0xff] }
   0x5   :  { %763 = vmatpush3.msra.mxu0 %v46_v1  ;;  %857 = vmatprep.subr.mxu1 %v46_v1  ;;  %v31_v12 = vld [vmem:[%s1215_s0 + $0x18] sm:$0xff]  ;;  %v32_v13 = vld [vmem:[%s1215_s0 + $0x20] sm:$0xff]  ;;  %v251_v15 = vld [vmem:[%s1216_s3 + $0x10] sm:$0xff] }
   0x6   :  { %764 = vmatprep.subr.mxu0 %v45_v3  ;;  %861 = vmatpush3.msra.mxu1 %v46_v1  ;;  %v39_v14 = vld [vmem:[%s1215_s0 + $0x58] sm:$0xff]  ;;  %v40_v16 = vld [vmem:[%s1215_s0 + $0x60] sm:$0xff]  ;;  %v471_v17 = vld [vmem:[%s1217_s5 + $0x10] sm:$0xff] }
   0x7   :  { %765 = vmatpush3.msra.mxu0 %v45_v3  ;;  %858 = vmatprep.subr.mxu1 %v45_v3  ;;  %v33_v18 = vld [vmem:[%s1215_s0 + $0x28] sm:$0xff]  ;;  %v34_v19 = vld [vmem:[%s1215_s0 + $0x30] sm:$0xff]  ;;  %v35_v24 = vld [vmem:[%s1215_s0 + $0x38] sm:$0xff] }
   0x8   :  { %766 = vmatprep.subr.mxu0 %v44_v4  ;;  %862 = vmatpush3.msra.mxu1 %v45_v3  ;;  %v41_v20 = vld [vmem:[%s1215_s0 + $0x68] sm:$0xff]  ;;  %v42_v22 = vld [vmem:[%s1215_s0 + $0x70] sm:$0xff]  ;;  %v43_v25 = vld [vmem:[%s1215_s0 + $0x78] sm:$0xff] }
   0x9   :  { %767 = vmatpush3.msra.mxu0 %v44_v4  ;;  %859 = vmatprep.subr.mxu1 %v44_v4  ;;  %v250_v21 = vld [vmem:[%s1216_s3 + $0x8] sm:$0xff]  ;;  %v249_v26 = vld [vmem:[%s1216_s3] sm:$0xff] }
   0xa   :  { %769 = vmatmul.mubr.msk.f32.vlgmr.msra.gmra.mxu0 %vm55_vm0, %v29_v5  ;;  %863 = vmatpush3.msra.mxu1 %v44_v4  ;;  %v470_v23 = vld [vmem:[%s1217_s5 + $0x8] sm:$0xff]  ;;  %v469_v27 = vld [vmem:[%s1217_s5] sm:$0xff] }
   0xb   :  { %771 = vmatprep.mubr.msk.f32.mxu0 %vm55_vm0, %v30_v6  ;;  %780 = vmatprep.mubr.msk.f32.mxu1 %vm55_vm0, %v36_v7  ;;  %v649_v29 = vld [vmem:[%s1218_s2] ss:$0 sm:$0xff] }
   0xc   :  { %781 = vmatmul.mubr.msk.f32.vlgmr.msra.gmra.mxu1 %vm55_vm0, %v37_v8  ;;  %792 = vmatprep.subr.mxu1 %v252_v9  ;;  %v1047_v61 = vld [vmem:[%s1219_s4] ss:$0 sm:$0xff] }
   0xd   :  { %783 = vmatprep.mubr.msk.f32.mxu1 %vm55_vm0, %v38_v10  ;;  %824 = vmatprep.subr.mxu0 %v472_v11  ;;  %v1052_v62 = vld [vmem:[%s1220_s6] ss:$0 sm:$0xff] }
   0xe   :  { %772 = vmatmul.mubr.msk.f32.gmra.mxu0 %vm55_vm0, %v31_v12  ;;  %793 = vmatpush3.msra.mxu1 %v252_v9 }
   0xf   :  { %774 = vmatprep.mubr.msk.f32.mxu0 %vm55_vm0, %v32_v13  ;;  %825 = vmatpush3.msra.mxu0 %v472_v11 }
  0x10   :  { %784 = vmatmul.mubr.msk.f32.gmra.mxu1 %vm55_vm0, %v39_v14  ;;  %794 = vmatprep.subr.mxu1 %v251_v15 }
  0x11   :  { %786 = vmatprep.mubr.msk.f32.mxu1 %vm55_vm0, %v40_v16  ;;  %826 = vmatprep.subr.mxu0 %v471_v17 }
  0x12   :  { %775 = vmatmul.mubr.msk.f32.gmra.mxu0 %vm55_vm0, %v33_v18  ;;  %795 = vmatpush3.msra.mxu1 %v251_v15 }
  0x13   :  { %777 = vmatprep.mubr.msk.f32.mxu0 %vm55_vm0, %v34_v19  ;;  %827 = vmatpush3.msra.mxu0 %v471_v17 }
  0x14   :  { %787 = vmatmul.mubr.msk.f32.gmra.mxu1 %vm55_vm0, %v41_v20  ;;  %796 = vmatprep.subr.mxu1 %v250_v21 }
  0x15   :  { %789 = vmatprep.mubr.msk.f32.mxu1 %vm55_vm0, %v42_v22  ;;  %828 = vmatprep.subr.mxu0 %v470_v23 }
  0x16   :  { %778 = vmatmul.mubr.msk.f32.gmra.mxu0 %vm55_vm0, %v35_v24  ;;  %797 = vmatpush3.msra.mxu1 %v250_v21 }
  0x17   :  { %829 = vmatpush3.msra.mxu0 %v470_v23  ;;  %798 = vmatprep.subr.mxu1 %v249_v26 }
  0x18   :  { %790 = vmatmul.mubr.msk.f32.gmra.mxu1 %vm55_vm0, %v43_v25  ;;  %830 = vmatprep.subr.mxu0 %v469_v27 }
  0x19   :  { %799 = vmatpush3.msra.mxu1 %v249_v26  ;;  %831 = vmatpush3.msra.mxu0 %v469_v27 }
  0xca   :  { %v770_v28 = vpop.f32.mrf.mxu0 }
  0xcb   :  { %v176_v33 = vadd.f32 %v770_v28, %v649_v29 }
  0xcc   :  { %v170_v30 = vpop.f32.mrf.mxu0  ;;  %v782_v31 = vpop.f32.mrf.mxu1 }
  0xcd   :  { %v171_v32 = vadd.f32 %v649_v29, %v170_v30  ;;  %v216_v53 = vadd.f32 %v782_v31, %v649_v29 }
  0xce   :  { %v773_v34 = vpop.f32.mrf.mxu0  ;;  %v210_v35 = vpop.f32.mrf.mxu1 }
  0xcf   :  { %800 = vmatprep.mubr.msk.f32.mxu1 %vm55_vm0, %v171_v32  ;;  %832 = vmatprep.mubr.msk.f32.mxu0 %vm55_vm0, %v171_v32  ;;  %v186_v39 = vadd.f32 %v773_v34, %v649_v29  ;;  %v211_v49 = vadd.f32 %v649_v29, %v210_v35 }
  0xd0   :  { %v180_v36 = vpop.f32.mrf.mxu0  ;;  %801 = vmatmul.mubr.msk.f32.vlgmr.msra.gmra.mxu1 %vm55_vm0, %v176_v33  ;;  %833 = vmatmul.mubr.msk.f32.vlgmr.msra.gmra.mxu0 %vm55_vm0, %v176_v33  ;;  %v785_v37 = vpop.f32.mrf.mxu1 }
  0xd1   :  { %v181_v38 = vadd.f32 %v649_v29, %v180_v36  ;;  %v226_v56 = vadd.f32 %v785_v37, %v649_v29 }
  0xd2   :  { %v776_v40 = vpop.f32.mrf.mxu0  ;;  %v220_v41 = vpop.f32.mrf.mxu1 }
  0xd3   :  { %803 = vmatprep.mubr.msk.f32.mxu1 %vm55_vm0, %v181_v38  ;;  %835 = vmatprep.mubr.msk.f32.mxu0 %vm55_vm0, %v181_v38  ;;  %v196_v44 = vadd.f32 %v776_v40, %v649_v29  ;;  %v221_v52 = vadd.f32 %v649_v29, %v220_v41 }
  0xd4   :  { %v190_v42 = vpop.f32.mrf.mxu0  ;;  %804 = vmatmul.mubr.msk.f32.gmra.mxu1 %vm55_vm0, %v186_v39  ;;  %836 = vmatmul.mubr.msk.f32.gmra.mxu0 %vm55_vm0, %v186_v39  ;;  %v788_v46 = vpop.f32.mrf.mxu1 }
  0xd5   :  { %v191_v43 = vadd.f32 %v649_v29, %v190_v42  ;;  %v236_v59 = vadd.f32 %v788_v46, %v649_v29 }
  0xd6   :  { %v779_v45 = vpop.f32.mrf.mxu0  ;;  %v230_v51 = vpop.f32.mrf.mxu1 }
  0xd7   :  { %806 = vmatprep.mubr.msk.f32.mxu1 %vm55_vm0, %v191_v43  ;;  %838 = vmatprep.mubr.msk.f32.mxu0 %vm55_vm0, %v191_v43  ;;  %v206_v50 = vadd.f32 %v779_v45, %v649_v29  ;;  %v231_v55 = vadd.f32 %v649_v29, %v230_v51 }
  0xd8   :  { %v200_v47 = vpop.f32.mrf.mxu0  ;;  %807 = vmatmul.mubr.msk.f32.gmra.mxu1 %vm55_vm0, %v196_v44  ;;  %839 = vmatmul.mubr.msk.f32.gmra.mxu0 %vm55_vm0, %v196_v44  ;;  %v791_v54 = vpop.f32.mrf.mxu1 }
  0xd9   :  { %v201_v48 = vadd.f32 %v649_v29, %v200_v47  ;;  %v246_v60 = vadd.f32 %v791_v54, %v649_v29 }
  0xda   :  { %v240_v57 = vpop.f32.mrf.mxu1 }
  0xdb   :  { %809 = vmatprep.mubr.msk.f32.mxu1 %vm55_vm0, %v201_v48  ;;  %841 = vmatprep.mubr.msk.f32.mxu0 %vm55_vm0, %v201_v48  ;;  %v241_v58 = vadd.f32 %v649_v29, %v240_v57 }
  0xdc   :  { %810 = vmatmul.mubr.msk.f32.gmra.mxu1 %vm55_vm0, %v206_v50  ;;  %842 = vmatmul.mubr.msk.f32.gmra.mxu0 %vm55_vm0, %v206_v50 }
  0xdd   :  { %812 = vmatprep.mubr.msk.f32.mxu1 %vm55_vm0, %v211_v49  ;;  %844 = vmatprep.mubr.msk.f32.mxu0 %vm55_vm0, %v211_v49 }
  0xe0   :  { %813 = vmatmul.mubr.msk.f32.gmra.mxu1 %vm55_vm0, %v216_v53  ;;  %845 = vmatmul.mubr.msk.f32.gmra.mxu0 %vm55_vm0, %v216_v53 }
  0xe1   :  { %815 = vmatprep.mubr.msk.f32.mxu1 %vm55_vm0, %v221_v52  ;;  %847 = vmatprep.mubr.msk.f32.mxu0 %vm55_vm0, %v221_v52 }
  0xe4   :  { %816 = vmatmul.mubr.msk.f32.gmra.mxu1 %vm55_vm0, %v226_v56  ;;  %848 = vmatmul.mubr.msk.f32.gmra.mxu0 %vm55_vm0, %v226_v56 }
  0xe5   :  { %818 = vmatprep.mubr.msk.f32.mxu1 %vm55_vm0, %v231_v55  ;;  %850 = vmatprep.mubr.msk.f32.mxu0 %vm55_vm0, %v231_v55 }
  0xe8   :  { %819 = vmatmul.mubr.msk.f32.gmra.mxu1 %vm55_vm0, %v236_v59  ;;  %851 = vmatmul.mubr.msk.f32.gmra.mxu0 %vm55_vm0, %v236_v59 }
  0xe9   :  { %821 = vmatprep.mubr.msk.f32.mxu1 %vm55_vm0, %v241_v58  ;;  %853 = vmatprep.mubr.msk.f32.mxu0 %vm55_vm0, %v241_v58 }
  0xec   :  { %822 = vmatmul.mubr.msk.f32.gmra.mxu1 %vm55_vm0, %v246_v60  ;;  %854 = vmatmul.mubr.msk.f32.gmra.mxu0 %vm55_vm0, %v246_v60 }
 0x190   :  { %v802_v63 = vpop.f32.mrf.mxu1  ;;  %v834_v0 = vpop.f32.mrf.mxu0 }
 0x191   :  { %v380_v1 = vadd.f32 %v802_v63, %v1047_v61  ;;  %v552_v2 = vadd.f32 %v834_v0, %v1052_v62 }
 0x192   :  { %v374_v3 = vpop.f32.mrf.mxu1  ;;  %v546_v4 = vpop.f32.mrf.mxu0 }
 0x193   :  { %454 = vst.msk [vmem:[%s1221_s7 + $0x8] sm:$0xff] %vm55_vm0, %v380_v1  ;;  %626 = vst.msk [vmem:[%s1222_s8 + $0x8] sm:$0xff] %vm55_vm0, %v552_v2  ;;  %v375_v5 = vadd.f32 %v1047_v61, %v374_v3  ;;  %v547_v6 = vadd.f32 %v1052_v62, %v546_v4 }
 0x194   :  { %v805_v7 = vpop.f32.mrf.mxu1  ;;  %v837_v8 = vpop.f32.mrf.mxu0 }
 0x195   :  { %453 = vst.msk [vmem:[%s1221_s7] sm:$0xff] %vm55_vm0, %v375_v5  ;;  %625 = vst.msk [vmem:[%s1222_s8] sm:$0xff] %vm55_vm0, %v547_v6  ;;  %v390_v9 = vadd.f32 %v805_v7, %v1047_v61  ;;  %v562_v10 = vadd.f32 %v837_v8, %v1052_v62 }
 0x196   :  { %v384_v11 = vpop.f32.mrf.mxu1  ;;  %v556_v12 = vpop.f32.mrf.mxu0 }
 0x197   :  { %456 = vst.msk [vmem:[%s1221_s7 + $0x18] sm:$0xff] %vm55_vm0, %v390_v9  ;;  %628 = vst.msk [vmem:[%s1222_s8 + $0x18] sm:$0xff] %vm55_vm0, %v562_v10  ;;  %v385_v13 = vadd.f32 %v1047_v61, %v384_v11  ;;  %v557_v14 = vadd.f32 %v1052_v62, %v556_v12 }
 0x198   :  { %v808_v15 = vpop.f32.mrf.mxu1  ;;  %v840_v16 = vpop.f32.mrf.mxu0 }
 0x199   :  { %455 = vst.msk [vmem:[%s1221_s7 + $0x10] sm:$0xff] %vm55_vm0, %v385_v13  ;;  %627 = vst.msk [vmem:[%s1222_s8 + $0x10] sm:$0xff] %vm55_vm0, %v557_v14  ;;  %v400_v17 = vadd.f32 %v808_v15, %v1047_v61  ;;  %v572_v18 = vadd.f32 %v840_v16, %v1052_v62 }
 0x19a   :  { %v394_v19 = vpop.f32.mrf.mxu1  ;;  %v566_v20 = vpop.f32.mrf.mxu0 }
 0x19b   :  { %458 = vst.msk [vmem:[%s1221_s7 + $0x28] sm:$0xff] %vm55_vm0, %v400_v17  ;;  %630 = vst.msk [vmem:[%s1222_s8 + $0x28] sm:$0xff] %vm55_vm0, %v572_v18  ;;  %v395_v21 = vadd.f32 %v1047_v61, %v394_v19  ;;  %v567_v22 = vadd.f32 %v1052_v62, %v566_v20 }
 0x19c   :  { %v811_v23 = vpop.f32.mrf.mxu1  ;;  %v843_v24 = vpop.f32.mrf.mxu0 }
 0x19d   :  { %457 = vst.msk [vmem:[%s1221_s7 + $0x20] sm:$0xff] %vm55_vm0, %v395_v21  ;;  %629 = vst.msk [vmem:[%s1222_s8 + $0x20] sm:$0xff] %vm55_vm0, %v567_v22  ;;  %v410_v25 = vadd.f32 %v811_v23, %v1047_v61  ;;  %v582_v26 = vadd.f32 %v843_v24, %v1052_v62 }
 0x19e   :  { %v404_v27 = vpop.f32.mrf.mxu1  ;;  %v576_v28 = vpop.f32.mrf.mxu0 }
 0x19f   :  { %460 = vst.msk [vmem:[%s1221_s7 + $0x38] sm:$0xff] %vm55_vm0, %v410_v25  ;;  %632 = vst.msk [vmem:[%s1222_s8 + $0x38] sm:$0xff] %vm55_vm0, %v582_v26  ;;  %v405_v29 = vadd.f32 %v1047_v61, %v404_v27  ;;  %v577_v30 = vadd.f32 %v1052_v62, %v576_v28 }
 0x1a0   :  { %v814_v31 = vpop.f32.mrf.mxu1  ;;  %v846_v32 = vpop.f32.mrf.mxu0 }
 0x1a1   :  { %459 = vst.msk [vmem:[%s1221_s7 + $0x30] sm:$0xff] %vm55_vm0, %v405_v29  ;;  %631 = vst.msk [vmem:[%s1222_s8 + $0x30] sm:$0xff] %vm55_vm0, %v577_v30  ;;  %v420_v33 = vadd.f32 %v814_v31, %v1047_v61  ;;  %v592_v34 = vadd.f32 %v846_v32, %v1052_v62 }
 0x1a2   :  { %v414_v35 = vpop.f32.mrf.mxu1  ;;  %v586_v36 = vpop.f32.mrf.mxu0 }
 0x1a3   :  { %462 = vst.msk [vmem:[%s1221_s7 + $0x48] sm:$0xff] %vm55_vm0, %v420_v33  ;;  %634 = vst.msk [vmem:[%s1222_s8 + $0x48] sm:$0xff] %vm55_vm0, %v592_v34  ;;  %v415_v37 = vadd.f32 %v1047_v61, %v414_v35  ;;  %v587_v38 = vadd.f32 %v1052_v62, %v586_v36 }
 0x1a4   :  { %v817_v39 = vpop.f32.mrf.mxu1  ;;  %v849_v40 = vpop.f32.mrf.mxu0 }
 0x1a5   :  { %461 = vst.msk [vmem:[%s1221_s7 + $0x40] sm:$0xff] %vm55_vm0, %v415_v37  ;;  %633 = vst.msk [vmem:[%s1222_s8 + $0x40] sm:$0xff] %vm55_vm0, %v587_v38  ;;  %v430_v41 = vadd.f32 %v817_v39, %v1047_v61  ;;  %v602_v42 = vadd.f32 %v849_v40, %v1052_v62 }
 0x1a6   :  { %v424_v43 = vpop.f32.mrf.mxu1  ;;  %v596_v44 = vpop.f32.mrf.mxu0 }
 0x1a7   :  { %464 = vst.msk [vmem:[%s1221_s7 + $0x58] sm:$0xff] %vm55_vm0, %v430_v41  ;;  %636 = vst.msk [vmem:[%s1222_s8 + $0x58] sm:$0xff] %vm55_vm0, %v602_v42  ;;  %v425_v45 = vadd.f32 %v1047_v61, %v424_v43  ;;  %v597_v46 = vadd.f32 %v1052_v62, %v596_v44 }
 0x1a8   :  { %v820_v47 = vpop.f32.mrf.mxu1  ;;  %v852_v48 = vpop.f32.mrf.mxu0 }
 0x1a9   :  { %463 = vst.msk [vmem:[%s1221_s7 + $0x50] sm:$0xff] %vm55_vm0, %v425_v45  ;;  %635 = vst.msk [vmem:[%s1222_s8 + $0x50] sm:$0xff] %vm55_vm0, %v597_v46  ;;  %v440_v49 = vadd.f32 %v820_v47, %v1047_v61  ;;  %v612_v50 = vadd.f32 %v852_v48, %v1052_v62 }
 0x1aa   :  { %v434_v51 = vpop.f32.mrf.mxu1  ;;  %v606_v52 = vpop.f32.mrf.mxu0 }
 0x1ab   :  { %466 = vst.msk [vmem:[%s1221_s7 + $0x68] sm:$0xff] %vm55_vm0, %v440_v49  ;;  %638 = vst.msk [vmem:[%s1222_s8 + $0x68] sm:$0xff] %vm55_vm0, %v612_v50  ;;  %v435_v53 = vadd.f32 %v1047_v61, %v434_v51  ;;  %v607_v54 = vadd.f32 %v1052_v62, %v606_v52 }
 0x1ac   :  { %v823_v55 = vpop.f32.mrf.mxu1  ;;  %v855_v56 = vpop.f32.mrf.mxu0 }
 0x1ad   :  { %465 = vst.msk [vmem:[%s1221_s7 + $0x60] sm:$0xff] %vm55_vm0, %v435_v53  ;;  %637 = vst.msk [vmem:[%s1222_s8 + $0x60] sm:$0xff] %vm55_vm0, %v607_v54  ;;  %v450_v57 = vadd.f32 %v823_v55, %v1047_v61  ;;  %v622_v58 = vadd.f32 %v855_v56, %v1052_v62 }
 0x1ae   :  { %v444_v59 = vpop.f32.mrf.mxu1  ;;  %v616_v60 = vpop.f32.mrf.mxu0 }
 0x1af   :  { %468 = vst.msk [vmem:[%s1221_s7 + $0x78] sm:$0xff] %vm55_vm0, %v450_v57  ;;  %640 = vst.msk [vmem:[%s1222_s8 + $0x78] sm:$0xff] %vm55_vm0, %v622_v58  ;;  %v445_v63 = vadd.f32 %v1047_v61, %v444_v59  ;;  %v617_v0 = vadd.f32 %v1052_v62, %v616_v60 }
 0x1b1   :  { %467 = vst.msk [vmem:[%s1221_s7 + $0x70] sm:$0xff] %vm55_vm0, %v445_v63  ;;  %639 = vst.msk [vmem:[%s1222_s8 + $0x70] sm:$0xff] %vm55_vm0, %v617_v0 }

</bundles_post_ra>
